<compile_context>
chip_gen: v7x
topology: tpu7x:2x2x1
jax: 0.10.0
libtpu: 0.0.40
codegen_flags: <defaults>
</compile_context>

<pallas_src>
import functools

import numpy as np
import jax
import jax.numpy as jnp
from jax.experimental import pallas as pl
from jax.experimental.pallas import tpu as pltpu

_INV_SQRT2 = 0.7071067811865476
_VMEM_LIMIT = 32 * 1024 * 1024  # safe on v5e/v6e/v7x; tiles here are tiny


def _round_up(x, m):
    return ((x + m - 1) // m) * m


def _pick_tm(m):
    # Largest row tile that stays a multiple of 8 and <= 256 rows (matches the
    # v6e/v7x 256-wide MXU; the compiler splits it on v5e's 128-wide MXU).
    return min(256, _round_up(m, 8))


# --------------------------------------------------------------------------
# Kernel A: GEMM (bf16 x bf16 -> f32) with fused bias / GELU / residual / LN.
# --------------------------------------------------------------------------
def _linear_kernel(*refs, apply_gelu, add_res, ln_mode, eps):
    i = 0
    a_ref = refs[i]; i += 1
    w_ref = refs[i]; i += 1
    b_ref = refs[i]; i += 1
    r_ref = None
    if add_res:
        r_ref = refs[i]; i += 1
    g_ref = bt_ref = None
    if ln_mode is not None:
        g_ref = refs[i]; i += 1
        bt_ref = refs[i]; i += 1
    o_ref = refs[i]

    if ln_mode == "pre":
        # LayerNorm over the input features before the matmul (prenorm=False).
        a = a_ref[...].astype(jnp.float32)
        mu = jnp.mean(a, axis=-1, keepdims=True)
        d = a - mu
        var = jnp.mean(d * d, axis=-1, keepdims=True)
        a = d * jax.lax.rsqrt(var + eps) * g_ref[...] + bt_ref[...]
        a_mm = a.astype(jnp.bfloat16)
    else:
        a_mm = a_ref[...].astype(jnp.bfloat16)

    acc = jnp.dot(a_mm, w_ref[...], preferred_element_type=jnp.float32)
    acc = acc + b_ref[...]
    if apply_gelu:
        # exact GELU: 0.5 * y * (1 + erf(y / sqrt(2)))  (PyTorch nn.GELU default)
        acc = 0.5 * acc * (1.0 + jax.lax.erf(acc * _INV_SQRT2))
    if add_res:
        acc = acc + r_ref[...].astype(jnp.float32)
    if ln_mode == "post":
        mu = jnp.mean(acc, axis=-1, keepdims=True)
        d = acc - mu
        var = jnp.mean(d * d, axis=-1, keepdims=True)
        acc = d * jax.lax.rsqrt(var + eps) * g_ref[...] + bt_ref[...]
    o_ref[...] = acc.astype(o_ref.dtype)


def _fused_linear(x2d, w_t, bias_row, *, apply_gelu=False, residual=None,
                  ln=None, ln_mode=None, eps=1e-6, out_dtype=jnp.bfloat16,
                  tm=None):
    """y = epilogue(x2d @ w_t + bias). x2d: (M, K); w_t: (K, N) bf16."""
    m, k = x2d.shape
    kw, n = w_t.shape
    assert kw == k
    if tm is None:
        tm = _pick_tm(m)
    add_res = residual is not None
    grid = (pl.cdiv(m, tm),)

    in_specs = [pl.BlockSpec((tm, k), lambda i: (i, 0)),     # activations
                pl.BlockSpec((k, n), lambda i: (0, 0)),      # weight (resident)
                pl.BlockSpec((1, n), lambda i: (0, 0))]      # bias row
    args = [x2d, w_t, bias_row]
    if add_res:
        in_specs.append(pl.BlockSpec((tm, n), lambda i: (i, 0)))
        args.append(residual)
    if ln_mode is not None:
        g, bt = ln
        dln = g.shape[1]
        in_specs.append(pl.BlockSpec((1, dln), lambda i: (0, 0)))
        in_specs.append(pl.BlockSpec((1, dln), lambda i: (0, 0)))
        args.extend([g, bt])

    out_itemsize = jnp.dtype(out_dtype).itemsize
    bytes_accessed = int(x2d.dtype.itemsize * m * k + w_t.dtype.itemsize * k * n
                         + 4 * n + out_itemsize * m * n
                         + (4 * m * n if add_res else 0))
    return pl.pallas_call(
        functools.partial(_linear_kernel, apply_gelu=apply_gelu,
                          add_res=add_res, ln_mode=ln_mode, eps=eps),
        out_shape=jax.ShapeDtypeStruct((m, n), out_dtype),
        grid_spec=pltpu.PrefetchScalarGridSpec(
            num_scalar_prefetch=0, grid=grid,
            in_specs=in_specs,
            out_specs=pl.BlockSpec((tm, n), lambda i: (i, 0))),
        compiler_params=pltpu.CompilerParams(
            dimension_semantics=("parallel",),
            vmem_limit_bytes=_VMEM_LIMIT),
        cost_estimate=pl.CostEstimate(
            flops=2 * m * k * n,
            transcendentals=(m * n if apply_gelu else 0),
            bytes_accessed=bytes_accessed),
    )(*args)


# --------------------------------------------------------------------------
# Kernel B: multi-head attention core; one batch element per grid step.
# qkv layout along the last dim is [q(h0..hH-1) | k(...) | v(...)] * head_dim.
# --------------------------------------------------------------------------
def _attn_kernel(*refs, num_heads, head_dim, dim, scale, has_mask):
    if has_mask:
        qkv_ref, mask_ref, o_ref = refs
    else:
        qkv_ref, o_ref = refs
        mask_ref = None
    qkv = qkv_ref[...]                         # (N, 3C) bf16
    outs = []
    for h in range(num_heads):
        lo = h * head_dim
        q = qkv[:, lo:lo + head_dim]
        k = qkv[:, dim + lo:dim + lo + head_dim]
        v = qkv[:, 2 * dim + lo:2 * dim + lo + head_dim]
        s = jax.lax.dot_general(q, k, (((1,), (1,)), ((), ())),
                                preferred_element_type=jnp.float32) * scale
        if has_mask:
            s = s + mask_ref[...]              # additive -inf mask ('Local')
        mx = jnp.max(s, axis=-1, keepdims=True)
        p = jnp.exp(s - mx)
        l = jnp.sum(p, axis=-1, keepdims=True)
        o = jnp.dot(p.astype(qkv.dtype), v, preferred_element_type=jnp.float32)
        outs.append(o * pl.reciprocal(l, approx=True))
    o_ref[...] = jnp.concatenate(outs, axis=-1).astype(o_ref.dtype)


def _attention(qkv3d, mask, *, num_heads, scale, has_mask,
               out_dtype=jnp.bfloat16):
    b, n, c3 = qkv3d.shape
    c = c3 // 3
    dh = c // num_heads
    in_specs = [pl.BlockSpec((None, n, c3), lambda i: (i, 0, 0))]
    args = [qkv3d]
    if has_mask:
        in_specs.append(pl.BlockSpec((n, n), lambda i: (0, 0)))
        args.append(mask)
    return pl.pallas_call(
        functools.partial(_attn_kernel, num_heads=num_heads, head_dim=dh,
                          dim=c, scale=scale, has_mask=has_mask),
        out_shape=jax.ShapeDtypeStruct((b, n, c), out_dtype),
        grid_spec=pltpu.PrefetchScalarGridSpec(
            num_scalar_prefetch=0, grid=(b,),
            in_specs=in_specs,
            out_specs=pl.BlockSpec((None, n, c), lambda i: (i, 0, 0))),
        compiler_params=pltpu.CompilerParams(
            dimension_semantics=("parallel",),
            vmem_limit_bytes=_VMEM_LIMIT),
        cost_estimate=pl.CostEstimate(
            flops=4 * b * num_heads * n * n * dh,
            transcendentals=b * num_heads * n * n,
            bytes_accessed=int(qkv3d.dtype.itemsize * b * n * c3
                               + jnp.dtype(out_dtype).itemsize * b * n * c
                               + (4 * n * n if has_mask else 0))),
    )(*args)


# --------------------------------------------------------------------------
# One-time parameter preprocessing (transpose + cast outside the forward).
# --------------------------------------------------------------------------
def prepare_params(raw, *, qkv_bias=False):
    def wt(w):
        return jnp.asarray(w).T.astype(jnp.bfloat16)       # (in, out) bf16

    def row(v):
        return jnp.asarray(v, jnp.float32).reshape(1, -1)   # (1, d) f32

    out_qkv = raw["qkv_w"].shape[0]
    qkv_b = raw["qkv_b"] if qkv_bias else jnp.zeros((out_qkv,), jnp.float32)
    return {
        "qkv_w_t": wt(raw["qkv_w"]), "qkv_b": row(qkv_b),
        "proj_w_t": wt(raw["proj_w"]), "proj_b": row(raw["proj_b"]),
        "fc1_w_t": wt(raw["fc1_w"]), "fc1_b": row(raw["fc1_b"]),
        "fc2_w_t": wt(raw["fc2_w"]), "fc2_b": row(raw["fc2_b"]),
        "ln1_g": row(raw["ln1_g"]), "ln1_b": row(raw["ln1_b"]),
        "ln2_g": row(raw["ln2_g"]), "ln2_b": row(raw["ln2_b"]),
    }


# --------------------------------------------------------------------------
# Local-mixer mask (same construction as the PyTorch module); unused for Global.
# --------------------------------------------------------------------------
def build_local_mixer_mask(H, W, hk, wk):
    mask = np.ones((H * W, H + hk - 1, W + wk - 1), dtype=np.float32)
    for h in range(H):
        for w in range(W):
            mask[h * W + w, h:h + hk, w:w + wk] = 0.0
    mask = mask[:, hk // 2:H + hk // 2, wk // 2:W + wk // 2].reshape(H * W, H * W)
    return jnp.asarray(np.where(mask < 1, 0.0, -np.inf), dtype=jnp.float32)


# --------------------------------------------------------------------------
# Block forward (prenorm=True default; Global/Local attention mixer).
# --------------------------------------------------------------------------
@functools.partial(jax.jit, static_argnames=("num_heads", "eps", "qk_scale",
                                             "prenorm", "has_mask"))
def block_forward(x, params, mask=None, *, num_heads, eps=1e-6, qk_scale=None,
                  prenorm=True, has_mask=False):
    b, n, c = x.shape
    dh = c // num_heads
    scale = float(qk_scale) if qk_scale is not None else dh ** (-0.5)
    p = params
    x2d = x.reshape(b * n, c).astype(jnp.float32)

    def run_attention(qkv2d):
        o = _attention(qkv2d.reshape(b, n, 3 * c), mask, num_heads=num_heads,
                       scale=scale, has_mask=has_mask)
        return o.reshape(b * n, c)

    if prenorm:
        # x = LN1(x + proj(attn(x))) ; x = LN2(x + fc2(gelu(fc1(x))))
        qkv = _fused_linear(x2d, p["qkv_w_t"], p["qkv_b"])
        attn_o = run_attention(qkv)
        x2d = _fused_linear(attn_o, p["proj_w_t"], p["proj_b"], residual=x2d,
                            ln=(p["ln1_g"], p["ln1_b"]), ln_mode="post",
                            eps=eps, out_dtype=jnp.float32)
        h = _fused_linear(x2d, p["fc1_w_t"], p["fc1_b"], apply_gelu=True)
        x2d = _fused_linear(h, p["fc2_w_t"], p["fc2_b"], residual=x2d,
                            ln=(p["ln2_g"], p["ln2_b"]), ln_mode="post",
                            eps=eps, out_dtype=jnp.float32)
    else:
        # x = x + proj(attn(LN1(x))) ; x = x + fc2(gelu(fc1(LN2(x))))
        qkv = _fused_linear(x2d, p["qkv_w_t"], p["qkv_b"],
                            ln=(p["ln1_g"], p["ln1_b"]), ln_mode="pre", eps=eps)
        attn_o = run_attention(qkv)
        x2d = _fused_linear(attn_o, p["proj_w_t"], p["proj_b"], residual=x2d,
                            out_dtype=jnp.float32)
        h = _fused_linear(x2d, p["fc1_w_t"], p["fc1_b"], apply_gelu=True,
                          ln=(p["ln2_g"], p["ln2_b"]), ln_mode="pre", eps=eps)
        x2d = _fused_linear(h, p["fc2_w_t"], p["fc2_b"], residual=x2d,
                            out_dtype=jnp.float32)
    return x2d.reshape(b, n, c)


# --------------------------------------------------------------------------
# Pure-JAX f32 reference (mirrors the PyTorch Block forward, eval mode).
# --------------------------------------------------------------------------
def _reference_block(x, raw, mask=None, *, num_heads, eps=1e-6, qk_scale=None,
                     prenorm=True):
    b, n, c = x.shape
    dh = c // num_heads
    scale = qk_scale if qk_scale is not None else dh ** (-0.5)
    hp = jax.lax.Precision.HIGHEST

    def ln(y, g, bt):
        mu = y.mean(-1, keepdims=True)
        var = ((y - mu) ** 2).mean(-1, keepdims=True)
        return (y - mu) / jnp.sqrt(var + eps) * g + bt

    def mixer(y):
        qkv = jnp.einsum("bnc,oc->bno", y, raw["qkv_w"], precision=hp)
        qkv = qkv.reshape(b, n, 3, num_heads, dh).transpose(2, 0, 3, 1, 4)
        q, k, v = qkv[0] * scale, qkv[1], qkv[2]
        attn = jnp.einsum("bhqd,bhkd->bhqk", q, k, precision=hp)
        if mask is not None:
            attn = attn + mask[None, None]
        attn = jax.nn.softmax(attn, axis=-1)
        o = jnp.einsum("bhqk,bhkd->bhqd", attn, v, precision=hp)
        o = o.transpose(0, 2, 1, 3).reshape(b, n, c)
        return (jnp.einsum("bnc,oc->bno", o, raw["proj_w"], precision=hp)
                + raw["proj_b"])

    def mlp(y):
        h = (jnp.einsum("bnc,oc->bno", y, raw["fc1_w"], precision=hp)
             + raw["fc1_b"])
        h = jax.nn.gelu(h, approximate=False)
        return (jnp.einsum("bnh,oh->bno", h, raw["fc2_w"], precision=hp)
                + raw["fc2_b"])

    if prenorm:
        x = ln(x + mixer(x), raw["ln1_g"], raw["ln1_b"])
        x = ln(x + mlp(x), raw["ln2_g"], raw["ln2_b"])
    else:
        x = x + mixer(ln(x, raw["ln1_g"], raw["ln1_b"]))
        x = x + mlp(ln(x, raw["ln2_g"], raw["ln2_b"]))
    return x


if __name__ == "__main__":
    # Shapes consistent with Block(dim=32, num_heads=4, mixer='Global',
    # mlp_ratio=4, prenorm=True) applied to a (B=2, N=8, C=32) sequence.
    B, N_SEQ, DIM, HEADS = 2, 8, 32, 4
    HIDDEN = int(DIM * 4.0)
    EPS = 1e-6

    key = jax.random.PRNGKey(0)
    ks = jax.random.split(key, 12)
    x = jax.random.normal(ks[0], (B, N_SEQ, DIM), dtype=jnp.float32)
    raw = {
        # torch nn.Linear layout: (out_features, in_features)
        "qkv_w": jax.random.normal(ks[1], (3 * DIM, DIM), jnp.float32) * DIM ** -0.5,
        "proj_w": jax.random.normal(ks[2], (DIM, DIM), jnp.float32) * DIM ** -0.5,
        "proj_b": jax.random.normal(ks[3], (DIM,), jnp.float32) * 0.02,
        "fc1_w": jax.random.normal(ks[4], (HIDDEN, DIM), jnp.float32) * DIM ** -0.5,
        "fc1_b": jax.random.normal(ks[5], (HIDDEN,), jnp.float32) * 0.02,
        "fc2_w": jax.random.normal(ks[6], (DIM, HIDDEN), jnp.float32) * HIDDEN ** -0.5,
        "fc2_b": jax.random.normal(ks[7], (DIM,), jnp.float32) * 0.02,
        "ln1_g": 1.0 + 0.1 * jax.random.normal(ks[8], (DIM,), jnp.float32),
        "ln1_b": 0.1 * jax.random.normal(ks[9], (DIM,), jnp.float32),
        "ln2_g": 1.0 + 0.1 * jax.random.normal(ks[10], (DIM,), jnp.float32),
        "ln2_b": 0.1 * jax.random.normal(ks[11], (DIM,), jnp.float32),
    }
    params = prepare_params(raw, qkv_bias=False)   # one-time transpose/cast

    # Global mixer -> no additive attention mask, mask DMA skipped entirely.
    out = block_forward(x, params, None, num_heads=HEADS, eps=EPS,
                        prenorm=True, has_mask=False)
    out = jax.block_until_ready(out)

    ref = _reference_block(x, raw, None, num_heads=HEADS, eps=EPS, prenorm=True)
    assert out.shape == (B, N_SEQ, DIM), out.shape
    max_err = float(jnp.max(jnp.abs(out.astype(jnp.float32) - ref)))
    # bf16 MXU operands vs f32 reference -> loosened tolerance.
    assert max_err < 5e-2, f"max abs err {max_err}"

    print("KERNEL_OK")
</pallas_src>

<mosaic_0001>
module attributes {stable_mosaic.version = 11 : i64} {
  func.func @_linear_kernel(%arg0: i32, %arg1: memref<16x32xf32, #tpu.memory_space<vmem>>, %arg2: memref<32x96xbf16, #tpu.memory_space<vmem>>, %arg3: memref<1x96xf32, #tpu.memory_space<vmem>>, %arg4: memref<16x96xbf16, #tpu.memory_space<vmem>>) attributes {dimension_semantics = [#tpu.dimension_semantics<parallel>], iteration_bounds = array<i64: 1>, scalar_prefetch = 0 : i64, scratch_operands = 0 : i64, tpu.core_type = #tpu.core_type<tc>, window_params = [{transform_indices = @transform_0, window_bounds = array<i64: 16, 32>}, {pipeline_mode = #tpu.pipeline_mode<synchronous>, transform_indices = @transform_1, window_bounds = array<i64: 32, 96>}, {pipeline_mode = #tpu.pipeline_mode<synchronous>, transform_indices = @transform_2, window_bounds = array<i64: 1, 96>}, {transform_indices = @transform_3, window_bounds = array<i64: 16, 96>}]} {
    %c0 = arith.constant 0 : index
    %c0_0 = arith.constant 0 : index
    %0 = vector.load %arg1[%c0, %c0_0] : memref<16x32xf32, #tpu.memory_space<vmem>>, vector<16x32xf32>
    %1 = arith.truncf %0 : vector<16x32xf32> to vector<16x32xbf16>
    %c0_1 = arith.constant 0 : index
    %c0_2 = arith.constant 0 : index
    %2 = vector.load %arg2[%c0_1, %c0_2] : memref<32x96xbf16, #tpu.memory_space<vmem>>, vector<32x96xbf16>
    %cst = arith.constant dense<0.000000e+00> : vector<16x96xf32>
    %3 = tpu.matmul %1, %2, %cst {dimension_numbers = #tpu.dot_dimension_numbers<[1], [0], [0], [1], [0, 0, 1, 1], [], []>} : vector<16x32xbf16>, vector<32x96xbf16>, vector<16x96xf32> -> vector<16x96xf32>
    %c0_3 = arith.constant 0 : index
    %c0_4 = arith.constant 0 : index
    %4 = vector.load %arg3[%c0_3, %c0_4] : memref<1x96xf32, #tpu.memory_space<vmem>>, vector<1x96xf32>
    %5 = vector.broadcast %4 : vector<1x96xf32> to vector<16x96xf32>
    %6 = arith.addf %3, %5 : vector<16x96xf32>
    %7 = arith.truncf %6 : vector<16x96xf32> to vector<16x96xbf16>
    %c0_5 = arith.constant 0 : index
    %c0_6 = arith.constant 0 : index
    %8 = vector.load %arg4[%c0_5, %c0_6] : memref<16x96xbf16, #tpu.memory_space<vmem>>, vector<16x96xbf16>
    tpu.vector_store %arg4[%c0_5, %c0_6], %7 {strides = array<i32>} : memref<16x96xbf16, #tpu.memory_space<vmem>>, vector<16x96xbf16>,
    return
  }
  func.func @transform_0(%arg0: i32) -> (i32, i32) {
    %c0_i32 = arith.constant 0 : i32
    %c0_i32_0 = arith.constant 0 : i32
    return %arg0, %c0_i32 : i32, i32
  }
  func.func @transform_1(%arg0: i32) -> (i32, i32) {
    %c0_i32 = arith.constant 0 : i32
    %c0_i32_0 = arith.constant 0 : i32
    %c0_i32_1 = arith.constant 0 : i32
    return %c0_i32, %c0_i32_0 : i32, i32
  }
  func.func @transform_2(%arg0: i32) -> (i32, i32) {
    %c0_i32 = arith.constant 0 : i32
    %c0_i32_0 = arith.constant 0 : i32
    %c0_i32_1 = arith.constant 0 : i32
    return %c0_i32, %c0_i32_0 : i32, i32
  }
  func.func @transform_3(%arg0: i32) -> (i32, i32) {
    %c0_i32 = arith.constant 0 : i32
    %c0_i32_0 = arith.constant 0 : i32
    return %arg0, %c0_i32 : i32, i32
  }
}

module attributes {stable_mosaic.version = 11 : i64} {
  func.func @_linear_kernel(%arg0: i32, %arg1: memref<16x32xf32, #tpu.memory_space<vmem>>, %arg2: memref<32x128xbf16, #tpu.memory_space<vmem>>, %arg3: memref<1x128xf32, #tpu.memory_space<vmem>>, %arg4: memref<16x128xbf16, #tpu.memory_space<vmem>>) attributes {dimension_semantics = [#tpu.dimension_semantics<parallel>], iteration_bounds = array<i64: 1>, scalar_prefetch = 0 : i64, scratch_operands = 0 : i64, tpu.core_type = #tpu.core_type<tc>, window_params = [{transform_indices = @transform_0, window_bounds = array<i64: 16, 32>}, {pipeline_mode = #tpu.pipeline_mode<synchronous>, transform_indices = @transform_1, window_bounds = array<i64: 32, 128>}, {pipeline_mode = #tpu.pipeline_mode<synchronous>, transform_indices = @transform_2, window_bounds = array<i64: 1, 128>}, {transform_indices = @transform_3, window_bounds = array<i64: 16, 128>}]} {
    %c0 = arith.constant 0 : index
    %c0_0 = arith.constant 0 : index
    %0 = vector.load %arg1[%c0, %c0_0] : memref<16x32xf32, #tpu.memory_space<vmem>>, vector<16x32xf32>
    %1 = arith.truncf %0 : vector<16x32xf32> to vector<16x32xbf16>
    %c0_1 = arith.constant 0 : index
    %c0_2 = arith.constant 0 : index
    %2 = vector.load %arg2[%c0_1, %c0_2] : memref<32x128xbf16, #tpu.memory_space<vmem>>, vector<32x128xbf16>
    %cst = arith.constant dense<0.000000e+00> : vector<16x128xf32>
    %3 = tpu.matmul %1, %2, %cst {dimension_numbers = #tpu.dot_dimension_numbers<[1], [0], [0], [1], [0, 0, 1, 1], [], []>} : vector<16x32xbf16>, vector<32x128xbf16>, vector<16x128xf32> -> vector<16x128xf32>
    %c0_3 = arith.constant 0 : index
    %c0_4 = arith.constant 0 : index
    %4 = vector.load %arg3[%c0_3, %c0_4] : memref<1x128xf32, #tpu.memory_space<vmem>>, vector<1x128xf32>
    %5 = vector.broadcast %4 : vector<1x128xf32> to vector<16x128xf32>
    %6 = arith.addf %3, %5 : vector<16x128xf32>
    %cst_5 = arith.constant 5.000000e-01 : f32
    %7 = vector.broadcast %cst_5 : f32 to vector<16x128xf32>
    %8 = arith.mulf %7, %6 : vector<16x128xf32>
    %cst_6 = arith.constant 0.707106769 : f32
    %9 = vector.broadcast %cst_6 : f32 to vector<16x128xf32>
    %10 = arith.mulf %6, %9 : vector<16x128xf32>
    %11 = math.erf %10 : vector<16x128xf32>
    %cst_7 = arith.constant 1.000000e+00 : f32
    %12 = vector.broadcast %cst_7 : f32 to vector<16x128xf32>
    %13 = arith.addf %12, %11 : vector<16x128xf32>
    %14 = arith.mulf %8, %13 : vector<16x128xf32>
    %15 = arith.truncf %14 : vector<16x128xf32> to vector<16x128xbf16>
    %c0_8 = arith.constant 0 : index
    %c0_9 = arith.constant 0 : index
    %16 = vector.load %arg4[%c0_8, %c0_9] : memref<16x128xbf16, #tpu.memory_space<vmem>>, vector<16x128xbf16>
    tpu.vector_store %arg4[%c0_8, %c0_9], %15 {strides = array<i32>} : memref<16x128xbf16, #tpu.memory_space<vmem>>, vector<16x128xbf16>,
    return
  }
  func.func @transform_0(%arg0: i32) -> (i32, i32) {
    %c0_i32 = arith.constant 0 : i32
    %c0_i32_0 = arith.constant 0 : i32
    return %arg0, %c0_i32 : i32, i32
  }
  func.func @transform_1(%arg0: i32) -> (i32, i32) {
    %c0_i32 = arith.constant 0 : i32
    %c0_i32_0 = arith.constant 0 : i32
    %c0_i32_1 = arith.constant 0 : i32
    return %c0_i32, %c0_i32_0 : i32, i32
  }
  func.func @transform_2(%arg0: i32) -> (i32, i32) {
    %c0_i32 = arith.constant 0 : i32
    %c0_i32_0 = arith.constant 0 : i32
    %c0_i32_1 = arith.constant 0 : i32
    return %c0_i32, %c0_i32_0 : i32, i32
  }
  func.func @transform_3(%arg0: i32) -> (i32, i32) {
    %c0_i32 = arith.constant 0 : i32
    %c0_i32_0 = arith.constant 0 : i32
    return %arg0, %c0_i32 : i32, i32
  }
}

module attributes {stable_mosaic.version = 11 : i64} {
  func.func @_linear_kernel(%arg0: i32, %arg1: memref<16x32xbf16, #tpu.memory_space<vmem>>, %arg2: memref<32x32xbf16, #tpu.memory_space<vmem>>, %arg3: memref<1x32xf32, #tpu.memory_space<vmem>>, %arg4: memref<16x32xf32, #tpu.memory_space<vmem>>, %arg5: memref<1x32xf32, #tpu.memory_space<vmem>>, %arg6: memref<1x32xf32, #tpu.memory_space<vmem>>, %arg7: memref<16x32xf32, #tpu.memory_space<vmem>>) attributes {dimension_semantics = [#tpu.dimension_semantics<parallel>], iteration_bounds = array<i64: 1>, scalar_prefetch = 0 : i64, scratch_operands = 0 : i64, tpu.core_type = #tpu.core_type<tc>, window_params = [{transform_indices = @transform_0, window_bounds = array<i64: 16, 32>}, {pipeline_mode = #tpu.pipeline_mode<synchronous>, transform_indices = @transform_1, window_bounds = array<i64: 32, 32>}, {pipeline_mode = #tpu.pipeline_mode<synchronous>, transform_indices = @transform_2, window_bounds = array<i64: 1, 32>}, {transform_indices = @transform_3, window_bounds = array<i64: 16, 32>}, {pipeline_mode = #tpu.pipeline_mode<synchronous>, transform_indices = @transform_4, window_bounds = array<i64: 1, 32>}, {pipeline_mode = #tpu.pipeline_mode<synchronous>, transform_indices = @transform_5, window_bounds = array<i64: 1, 32>}, {transform_indices = @transform_6, window_bounds = array<i64: 16, 32>}]} {
    %c0 = arith.constant 0 : index
    %c0_0 = arith.constant 0 : index
    %0 = vector.load %arg1[%c0, %c0_0] : memref<16x32xbf16, #tpu.memory_space<vmem>>, vector<16x32xbf16>
    %c0_1 = arith.constant 0 : index
    %c0_2 = arith.constant 0 : index
    %1 = vector.load %arg2[%c0_1, %c0_2] : memref<32x32xbf16, #tpu.memory_space<vmem>>, vector<32x32xbf16>
    %cst = arith.constant dense<0.000000e+00> : vector<16x32xf32>
    %2 = tpu.matmul %0, %1, %cst {dimension_numbers = #tpu.dot_dimension_numbers<[1], [0], [0], [1], [0, 0, 1, 1], [], []>} : vector<16x32xbf16>, vector<32x32xbf16>, vector<16x32xf32> -> vector<16x32xf32>
    %c0_3 = arith.constant 0 : index
    %c0_4 = arith.constant 0 : index
    %3 = vector.load %arg3[%c0_3, %c0_4] : memref<1x32xf32, #tpu.memory_space<vmem>>, vector<1x32xf32>
    %4 = vector.broadcast %3 : vector<1x32xf32> to vector<16x32xf32>
    %5 = arith.addf %2, %4 : vector<16x32xf32>
    %c0_5 = arith.constant 0 : index
    %c0_6 = arith.constant 0 : index
    %6 = vector.load %arg4[%c0_5, %c0_6] : memref<16x32xf32, #tpu.memory_space<vmem>>, vector<16x32xf32>
    %7 = arith.addf %5, %6 : vector<16x32xf32>
    %cst_7 = arith.constant dense<0.000000e+00> : vector<16xf32>
    %8 = vector.multi_reduction <add>, %7, %cst_7 [1] : vector<16x32xf32> to vector<16xf32>
    %9 = vector.shape_cast %8 : vector<16xf32> to vector<16x1xf32>
    %cst_8 = arith.constant 3.200000e+01 : f32
    %10 = vector.broadcast %cst_8 : f32 to vector<16x1xf32>
    %11 = arith.divf %9, %10 : vector<16x1xf32>
    %12 = vector.broadcast %11 : vector<16x1xf32> to vector<16x32xf32>
    %13 = arith.subf %7, %12 : vector<16x32xf32>
    %14 = arith.mulf %13, %13 : vector<16x32xf32>
    %cst_9 = arith.constant dense<0.000000e+00> : vector<16xf32>
    %15 = vector.multi_reduction <add>, %14, %cst_9 [1] : vector<16x32xf32> to vector<16xf32>
    %16 = vector.shape_cast %15 : vector<16xf32> to vector<16x1xf32>
    %cst_10 = arith.constant 3.200000e+01 : f32
    %17 = vector.broadcast %cst_10 : f32 to vector<16x1xf32>
    %18 = arith.divf %16, %17 : vector<16x1xf32>
    %cst_11 = arith.constant 9.99999997E-7 : f32
    %19 = vector.broadcast %cst_11 : f32 to vector<16x1xf32>
    %20 = arith.addf %18, %19 : vector<16x1xf32>
    %21 = math.rsqrt %20 : vector<16x1xf32>
    %22 = vector.broadcast %21 : vector<16x1xf32> to vector<16x32xf32>
    %23 = arith.mulf %13, %22 : vector<16x32xf32>
    %c0_12 = arith.constant 0 : index
    %c0_13 = arith.constant 0 : index
    %24 = vector.load %arg5[%c0_12, %c0_13] : memref<1x32xf32, #tpu.memory_space<vmem>>, vector<1x32xf32>
    %25 = vector.broadcast %24 : vector<1x32xf32> to vector<16x32xf32>
    %26 = arith.mulf %23, %25 : vector<16x32xf32>
    %c0_14 = arith.constant 0 : index
    %c0_15 = arith.constant 0 : index
    %27 = vector.load %arg6[%c0_14, %c0_15] : memref<1x32xf32, #tpu.memory_space<vmem>>, vector<1x32xf32>
    %28 = vector.broadcast %27 : vector<1x32xf32> to vector<16x32xf32>
    %29 = arith.addf %26, %28 : vector<16x32xf32>
    %c0_16 = arith.constant 0 : index
    %c0_17 = arith.constant 0 : index
    %30 = vector.load %arg7[%c0_16, %c0_17] : memref<16x32xf32, #tpu.memory_space<vmem>>, vector<16x32xf32>
    tpu.vector_store %arg7[%c0_16, %c0_17], %29 {strides = array<i32>} : memref<16x32xf32, #tpu.memory_space<vmem>>, vector<16x32xf32>,
    return
  }
  func.func @transform_0(%arg0: i32) -> (i32, i32) {
    %c0_i32 = arith.constant 0 : i32
    %c0_i32_0 = arith.constant 0 : i32
    return %arg0, %c0_i32 : i32, i32
  }
  func.func @transform_1(%arg0: i32) -> (i32, i32) {
    %c0_i32 = arith.constant 0 : i32
    %c0_i32_0 = arith.constant 0 : i32
    %c0_i32_1 = arith.constant 0 : i32
    return %c0_i32, %c0_i32_0 : i32, i32
  }
  func.func @transform_2(%arg0: i32) -> (i32, i32) {
    %c0_i32 = arith.constant 0 : i32
    %c0_i32_0 = arith.constant 0 : i32
    %c0_i32_1 = arith.constant 0 : i32
    return %c0_i32, %c0_i32_0 : i32, i32
  }
  func.func @transform_3(%arg0: i32) -> (i32, i32) {
    %c0_i32 = arith.constant 0 : i32
    %c0_i32_0 = arith.constant 0 : i32
    return %arg0, %c0_i32 : i32, i32
  }
  func.func @transform_4(%arg0: i32) -> (i32, i32) {
    %c0_i32 = arith.constant 0 : i32
    %c0_i32_0 = arith.constant 0 : i32
    %c0_i32_1 = arith.constant 0 : i32
    return %c0_i32, %c0_i32_0 : i32, i32
  }
  func.func @transform_5(%arg0: i32) -> (i32, i32) {
    %c0_i32 = arith.constant 0 : i32
    %c0_i32_0 = arith.constant 0 : i32
    %c0_i32_1 = arith.constant 0 : i32
    return %c0_i32, %c0_i32_0 : i32, i32
  }
  func.func @transform_6(%arg0: i32) -> (i32, i32) {
    %c0_i32 = arith.constant 0 : i32
    %c0_i32_0 = arith.constant 0 : i32
    return %arg0, %c0_i32 : i32, i32
  }
}

module attributes {stable_mosaic.version = 11 : i64} {
  func.func @_attn_kernel(%arg0: i32, %arg1: memref<1x8x96xbf16, #tpu.memory_space<vmem>>, %arg2: memref<1x8x32xbf16, #tpu.memory_space<vmem>>) attributes {dimension_semantics = [#tpu.dimension_semantics<parallel>], iteration_bounds = array<i64: 2>, scalar_prefetch = 0 : i64, scratch_operands = 0 : i64, tpu.core_type = #tpu.core_type<tc>, window_params = [{transform_indices = @transform_0, window_bounds = array<i64: 1, 8, 96>}, {transform_indices = @transform_1, window_bounds = array<i64: 1, 8, 32>}]} {
    %c0 = arith.constant 0 : index
    %c0_0 = arith.constant 0 : index
    %c0_1 = arith.constant 0 : index
    %0 = vector.load %arg1[%c0, %c0_0, %c0_1] : memref<1x8x96xbf16, #tpu.memory_space<vmem>>, vector<1x8x96xbf16>
    %1 = vector.shape_cast %0 : vector<1x8x96xbf16> to vector<8x96xbf16>
    %2 = vector.extract_strided_slice %1 {offsets = [0, 0], sizes = [8, 8], strides = [1, 1]} : vector<8x96xbf16> to vector<8x8xbf16>
    %3 = vector.extract_strided_slice %1 {offsets = [0, 32], sizes = [8, 8], strides = [1, 1]} : vector<8x96xbf16> to vector<8x8xbf16>
    %4 = vector.extract_strided_slice %1 {offsets = [0, 64], sizes = [8, 8], strides = [1, 1]} : vector<8x96xbf16> to vector<8x8xbf16>
    %cst = arith.constant dense<0.000000e+00> : vector<8x8xf32>
    %5 = tpu.matmul %2, %3, %cst {dimension_numbers = #tpu.dot_dimension_numbers<[1], [1], [0], [0], [0, 0, 1, 0], [], []>} : vector<8x8xbf16>, vector<8x8xbf16>, vector<8x8xf32> -> vector<8x8xf32>
    %cst_2 = arith.constant 0.353553385 : f32
    %6 = vector.broadcast %cst_2 : f32 to vector<8x8xf32>
    %7 = arith.mulf %5, %6 : vector<8x8xf32>
    %cst_3 = arith.constant dense<0xFF800000> : vector<8xf32>
    %8 = vector.multi_reduction <maximumf>, %7, %cst_3 [1] : vector<8x8xf32> to vector<8xf32>
    %9 = vector.shape_cast %8 : vector<8xf32> to vector<8x1xf32>
    %10 = vector.broadcast %9 : vector<8x1xf32> to vector<8x8xf32>
    %11 = arith.subf %7, %10 : vector<8x8xf32>
    %12 = math.exp %11 : vector<8x8xf32>
    %cst_4 = arith.constant dense<0.000000e+00> : vector<8xf32>
    %13 = vector.multi_reduction <add>, %12, %cst_4 [1] : vector<8x8xf32> to vector<8xf32>
    %14 = vector.shape_cast %13 : vector<8xf32> to vector<8x1xf32>
    %15 = arith.truncf %12 : vector<8x8xf32> to vector<8x8xbf16>
    %cst_5 = arith.constant dense<0.000000e+00> : vector<8x8xf32>
    %16 = tpu.matmul %15, %4, %cst_5 {dimension_numbers = #tpu.dot_dimension_numbers<[1], [0], [0], [1], [0, 0, 1, 1], [], []>} : vector<8x8xbf16>, vector<8x8xbf16>, vector<8x8xf32> -> vector<8x8xf32>
    %17 = tpu.reciprocal %14 {approx = true} : vector<8x1xf32> -> vector<8x1xf32>
    %18 = vector.broadcast %17 : vector<8x1xf32> to vector<8x8xf32>
    %19 = arith.mulf %16, %18 : vector<8x8xf32>
    %20 = vector.extract_strided_slice %1 {offsets = [0, 8], sizes = [8, 8], strides = [1, 1]} : vector<8x96xbf16> to vector<8x8xbf16>
    %21 = vector.extract_strided_slice %1 {offsets = [0, 40], sizes = [8, 8], strides = [1, 1]} : vector<8x96xbf16> to vector<8x8xbf16>
    %22 = vector.extract_strided_slice %1 {offsets = [0, 72], sizes = [8, 8], strides = [1, 1]} : vector<8x96xbf16> to vector<8x8xbf16>
    %cst_6 = arith.constant dense<0.000000e+00> : vector<8x8xf32>
    %23 = tpu.matmul %20, %21, %cst_6 {dimension_numbers = #tpu.dot_dimension_numbers<[1], [1], [0], [0], [0, 0, 1, 0], [], []>} : vector<8x8xbf16>, vector<8x8xbf16>, vector<8x8xf32> -> vector<8x8xf32>
    %cst_7 = arith.constant 0.353553385 : f32
    %24 = vector.broadcast %cst_7 : f32 to vector<8x8xf32>
    %25 = arith.mulf %23, %24 : vector<8x8xf32>
    %cst_8 = arith.constant dense<0xFF800000> : vector<8xf32>
    %26 = vector.multi_reduction <maximumf>, %25, %cst_8 [1] : vector<8x8xf32> to vector<8xf32>
    %27 = vector.shape_cast %26 : vector<8xf32> to vector<8x1xf32>
    %28 = vector.broadcast %27 : vector<8x1xf32> to vector<8x8xf32>
    %29 = arith.subf %25, %28 : vector<8x8xf32>
    %30 = math.exp %29 : vector<8x8xf32>
    %cst_9 = arith.constant dense<0.000000e+00> : vector<8xf32>
    %31 = vector.multi_reduction <add>, %30, %cst_9 [1] : vector<8x8xf32> to vector<8xf32>
    %32 = vector.shape_cast %31 : vector<8xf32> to vector<8x1xf32>
    %33 = arith.truncf %30 : vector<8x8xf32> to vector<8x8xbf16>
    %cst_10 = arith.constant dense<0.000000e+00> : vector<8x8xf32>
    %34 = tpu.matmul %33, %22, %cst_10 {dimension_numbers = #tpu.dot_dimension_numbers<[1], [0], [0], [1], [0, 0, 1, 1], [], []>} : vector<8x8xbf16>, vector<8x8xbf16>, vector<8x8xf32> -> vector<8x8xf32>
    %35 = tpu.reciprocal %32 {approx = true} : vector<8x1xf32> -> vector<8x1xf32>
    %36 = vector.broadcast %35 : vector<8x1xf32> to vector<8x8xf32>
    %37 = arith.mulf %34, %36 : vector<8x8xf32>
    %38 = vector.extract_strided_slice %1 {offsets = [0, 16], sizes = [8, 8], strides = [1, 1]} : vector<8x96xbf16> to vector<8x8xbf16>
    %39 = vector.extract_strided_slice %1 {offsets = [0, 48], sizes = [8, 8], strides = [1, 1]} : vector<8x96xbf16> to vector<8x8xbf16>
    %40 = vector.extract_strided_slice %1 {offsets = [0, 80], sizes = [8, 8], strides = [1, 1]} : vector<8x96xbf16> to vector<8x8xbf16>
    %cst_11 = arith.constant dense<0.000000e+00> : vector<8x8xf32>
    %41 = tpu.matmul %38, %39, %cst_11 {dimension_numbers = #tpu.dot_dimension_numbers<[1], [1], [0], [0], [0, 0, 1, 0], [], []>} : vector<8x8xbf16>, vector<8x8xbf16>, vector<8x8xf32> -> vector<8x8xf32>
    %cst_12 = arith.constant 0.353553385 : f32
    %42 = vector.broadcast %cst_12 : f32 to vector<8x8xf32>
    %43 = arith.mulf %41, %42 : vector<8x8xf32>
    %cst_13 = arith.constant dense<0xFF800000> : vector<8xf32>
    %44 = vector.multi_reduction <maximumf>, %43, %cst_13 [1] : vector<8x8xf32> to vector<8xf32>
    %45 = vector.shape_cast %44 : vector<8xf32> to vector<8x1xf32>
    %46 = vector.broadcast %45 : vector<8x1xf32> to vector<8x8xf32>
    %47 = arith.subf %43, %46 : vector<8x8xf32>
    %48 = math.exp %47 : vector<8x8xf32>
    %cst_14 = arith.constant dense<0.000000e+00> : vector<8xf32>
    %49 = vector.multi_reduction <add>, %48, %cst_14 [1] : vector<8x8xf32> to vector<8xf32>
    %50 = vector.shape_cast %49 : vector<8xf32> to vector<8x1xf32>
    %51 = arith.truncf %48 : vector<8x8xf32> to vector<8x8xbf16>
    %cst_15 = arith.constant dense<0.000000e+00> : vector<8x8xf32>
    %52 = tpu.matmul %51, %40, %cst_15 {dimension_numbers = #tpu.dot_dimension_numbers<[1], [0], [0], [1], [0, 0, 1, 1], [], []>} : vector<8x8xbf16>, vector<8x8xbf16>, vector<8x8xf32> -> vector<8x8xf32>
    %53 = tpu.reciprocal %50 {approx = true} : vector<8x1xf32> -> vector<8x1xf32>
    %54 = vector.broadcast %53 : vector<8x1xf32> to vector<8x8xf32>
    %55 = arith.mulf %52, %54 : vector<8x8xf32>
    %56 = vector.extract_strided_slice %1 {offsets = [0, 24], sizes = [8, 8], strides = [1, 1]} : vector<8x96xbf16> to vector<8x8xbf16>
    %57 = vector.extract_strided_slice %1 {offsets = [0, 56], sizes = [8, 8], strides = [1, 1]} : vector<8x96xbf16> to vector<8x8xbf16>
    %58 = vector.extract_strided_slice %1 {offsets = [0, 88], sizes = [8, 8], strides = [1, 1]} : vector<8x96xbf16> to vector<8x8xbf16>
    %cst_16 = arith.constant dense<0.000000e+00> : vector<8x8xf32>
    %59 = tpu.matmul %56, %57, %cst_16 {dimension_numbers = #tpu.dot_dimension_numbers<[1], [1], [0], [0], [0, 0, 1, 0], [], []>} : vector<8x8xbf16>, vector<8x8xbf16>, vector<8x8xf32> -> vector<8x8xf32>
    %cst_17 = arith.constant 0.353553385 : f32
    %60 = vector.broadcast %cst_17 : f32 to vector<8x8xf32>
    %61 = arith.mulf %59, %60 : vector<8x8xf32>
    %cst_18 = arith.constant dense<0xFF800000> : vector<8xf32>
    %62 = vector.multi_reduction <maximumf>, %61, %cst_18 [1] : vector<8x8xf32> to vector<8xf32>
    %63 = vector.shape_cast %62 : vector<8xf32> to vector<8x1xf32>
    %64 = vector.broadcast %63 : vector<8x1xf32> to vector<8x8xf32>
    %65 = arith.subf %61, %64 : vector<8x8xf32>
    %66 = math.exp %65 : vector<8x8xf32>
    %cst_19 = arith.constant dense<0.000000e+00> : vector<8xf32>
    %67 = vector.multi_reduction <add>, %66, %cst_19 [1] : vector<8x8xf32> to vector<8xf32>
    %68 = vector.shape_cast %67 : vector<8xf32> to vector<8x1xf32>
    %69 = arith.truncf %66 : vector<8x8xf32> to vector<8x8xbf16>
    %cst_20 = arith.constant dense<0.000000e+00> : vector<8x8xf32>
    %70 = tpu.matmul %69, %58, %cst_20 {dimension_numbers = #tpu.dot_dimension_numbers<[1], [0], [0], [1], [0, 0, 1, 1], [], []>} : vector<8x8xbf16>, vector<8x8xbf16>, vector<8x8xf32> -> vector<8x8xf32>
    %71 = tpu.reciprocal %68 {approx = true} : vector<8x1xf32> -> vector<8x1xf32>
    %72 = vector.broadcast %71 : vector<8x1xf32> to vector<8x8xf32>
    %73 = arith.mulf %70, %72 : vector<8x8xf32>
    %74 = tpu.concatenate %19, %37, %55, %73 in 1 : vector<8x8xf32>, vector<8x8xf32>, vector<8x8xf32>, vector<8x8xf32> -> vector<8x32xf32>
    %75 = arith.truncf %74 : vector<8x32xf32> to vector<8x32xbf16>
    %c0_21 = arith.constant 0 : index
    %c0_22 = arith.constant 0 : index
    %c0_23 = arith.constant 0 : index
    %76 = vector.load %arg2[%c0_21, %c0_22, %c0_23] : memref<1x8x32xbf16, #tpu.memory_space<vmem>>, vector<1x8x32xbf16>
    %77 = vector.shape_cast %76 : vector<1x8x32xbf16> to vector<8x32xbf16>
    %78 = vector.shape_cast %75 : vector<8x32xbf16> to vector<1x8x32xbf16>
    tpu.vector_store %arg2[%c0_21, %c0_22, %c0_23], %78 {strides = array<i32>} : memref<1x8x32xbf16, #tpu.memory_space<vmem>>, vector<1x8x32xbf16>,
    return
  }
  func.func @transform_0(%arg0: i32) -> (i32, i32, i32) {
    %c0_i32 = arith.constant 0 : i32
    %c0_i32_0 = arith.constant 0 : i32
    %c0_i32_1 = arith.constant 0 : i32
    return %arg0, %c0_i32, %c0_i32_0 : i32, i32, i32
  }
  func.func @transform_1(%arg0: i32) -> (i32, i32, i32) {
    %c0_i32 = arith.constant 0 : i32
    %c0_i32_0 = arith.constant 0 : i32
    %c0_i32_1 = arith.constant 0 : i32
    return %arg0, %c0_i32, %c0_i32_0 : i32, i32, i32
  }
}

module attributes {stable_mosaic.version = 11 : i64} {
  func.func @_linear_kernel(%arg0: i32, %arg1: memref<16x128xbf16, #tpu.memory_space<vmem>>, %arg2: memref<128x32xbf16, #tpu.memory_space<vmem>>, %arg3: memref<1x32xf32, #tpu.memory_space<vmem>>, %arg4: memref<16x32xf32, #tpu.memory_space<vmem>>, %arg5: memref<1x32xf32, #tpu.memory_space<vmem>>, %arg6: memref<1x32xf32, #tpu.memory_space<vmem>>, %arg7: memref<16x32xf32, #tpu.memory_space<vmem>>) attributes {dimension_semantics = [#tpu.dimension_semantics<parallel>], iteration_bounds = array<i64: 1>, scalar_prefetch = 0 : i64, scratch_operands = 0 : i64, tpu.core_type = #tpu.core_type<tc>, window_params = [{transform_indices = @transform_0, window_bounds = array<i64: 16, 128>}, {pipeline_mode = #tpu.pipeline_mode<synchronous>, transform_indices = @transform_1, window_bounds = array<i64: 128, 32>}, {pipeline_mode = #tpu.pipeline_mode<synchronous>, transform_indices = @transform_2, window_bounds = array<i64: 1, 32>}, {transform_indices = @transform_3, window_bounds = array<i64: 16, 32>}, {pipeline_mode = #tpu.pipeline_mode<synchronous>, transform_indices = @transform_4, window_bounds = array<i64: 1, 32>}, {pipeline_mode = #tpu.pipeline_mode<synchronous>, transform_indices = @transform_5, window_bounds = array<i64: 1, 32>}, {transform_indices = @transform_6, window_bounds = array<i64: 16, 32>}]} {
    %c0 = arith.constant 0 : index
    %c0_0 = arith.constant 0 : index
    %0 = vector.load %arg1[%c0, %c0_0] : memref<16x128xbf16, #tpu.memory_space<vmem>>, vector<16x128xbf16>
    %c0_1 = arith.constant 0 : index
    %c0_2 = arith.constant 0 : index
    %1 = vector.load %arg2[%c0_1, %c0_2] : memref<128x32xbf16, #tpu.memory_space<vmem>>, vector<128x32xbf16>
    %cst = arith.constant dense<0.000000e+00> : vector<16x32xf32>
    %2 = tpu.matmul %0, %1, %cst {dimension_numbers = #tpu.dot_dimension_numbers<[1], [0], [0], [1], [0, 0, 1, 1], [], []>} : vector<16x128xbf16>, vector<128x32xbf16>, vector<16x32xf32> -> vector<16x32xf32>
    %c0_3 = arith.constant 0 : index
    %c0_4 = arith.constant 0 : index
    %3 = vector.load %arg3[%c0_3, %c0_4] : memref<1x32xf32, #tpu.memory_space<vmem>>, vector<1x32xf32>
    %4 = vector.broadcast %3 : vector<1x32xf32> to vector<16x32xf32>
    %5 = arith.addf %2, %4 : vector<16x32xf32>
    %c0_5 = arith.constant 0 : index
    %c0_6 = arith.constant 0 : index
    %6 = vector.load %arg4[%c0_5, %c0_6] : memref<16x32xf32, #tpu.memory_space<vmem>>, vector<16x32xf32>
    %7 = arith.addf %5, %6 : vector<16x32xf32>
    %cst_7 = arith.constant dense<0.000000e+00> : vector<16xf32>
    %8 = vector.multi_reduction <add>, %7, %cst_7 [1] : vector<16x32xf32> to vector<16xf32>
    %9 = vector.shape_cast %8 : vector<16xf32> to vector<16x1xf32>
    %cst_8 = arith.constant 3.200000e+01 : f32
    %10 = vector.broadcast %cst_8 : f32 to vector<16x1xf32>
    %11 = arith.divf %9, %10 : vector<16x1xf32>
    %12 = vector.broadcast %11 : vector<16x1xf32> to vector<16x32xf32>
    %13 = arith.subf %7, %12 : vector<16x32xf32>
    %14 = arith.mulf %13, %13 : vector<16x32xf32>
    %cst_9 = arith.constant dense<0.000000e+00> : vector<16xf32>
    %15 = vector.multi_reduction <add>, %14, %cst_9 [1] : vector<16x32xf32> to vector<16xf32>
    %16 = vector.shape_cast %15 : vector<16xf32> to vector<16x1xf32>
    %cst_10 = arith.constant 3.200000e+01 : f32
    %17 = vector.broadcast %cst_10 : f32 to vector<16x1xf32>
    %18 = arith.divf %16, %17 : vector<16x1xf32>
    %cst_11 = arith.constant 9.99999997E-7 : f32
    %19 = vector.broadcast %cst_11 : f32 to vector<16x1xf32>
    %20 = arith.addf %18, %19 : vector<16x1xf32>
    %21 = math.rsqrt %20 : vector<16x1xf32>
    %22 = vector.broadcast %21 : vector<16x1xf32> to vector<16x32xf32>
    %23 = arith.mulf %13, %22 : vector<16x32xf32>
    %c0_12 = arith.constant 0 : index
    %c0_13 = arith.constant 0 : index
    %24 = vector.load %arg5[%c0_12, %c0_13] : memref<1x32xf32, #tpu.memory_space<vmem>>, vector<1x32xf32>
    %25 = vector.broadcast %24 : vector<1x32xf32> to vector<16x32xf32>
    %26 = arith.mulf %23, %25 : vector<16x32xf32>
    %c0_14 = arith.constant 0 : index
    %c0_15 = arith.constant 0 : index
    %27 = vector.load %arg6[%c0_14, %c0_15] : memref<1x32xf32, #tpu.memory_space<vmem>>, vector<1x32xf32>
    %28 = vector.broadcast %27 : vector<1x32xf32> to vector<16x32xf32>
    %29 = arith.addf %26, %28 : vector<16x32xf32>
    %c0_16 = arith.constant 0 : index
    %c0_17 = arith.constant 0 : index
    %30 = vector.load %arg7[%c0_16, %c0_17] : memref<16x32xf32, #tpu.memory_space<vmem>>, vector<16x32xf32>
    tpu.vector_store %arg7[%c0_16, %c0_17], %29 {strides = array<i32>} : memref<16x32xf32, #tpu.memory_space<vmem>>, vector<16x32xf32>,
    return
  }
  func.func @transform_0(%arg0: i32) -> (i32, i32) {
    %c0_i32 = arith.constant 0 : i32
    %c0_i32_0 = arith.constant 0 : i32
    return %arg0, %c0_i32 : i32, i32
  }
  func.func @transform_1(%arg0: i32) -> (i32, i32) {
    %c0_i32 = arith.constant 0 : i32
    %c0_i32_0 = arith.constant 0 : i32
    %c0_i32_1 = arith.constant 0 : i32
    return %c0_i32, %c0_i32_0 : i32, i32
  }
  func.func @transform_2(%arg0: i32) -> (i32, i32) {
    %c0_i32 = arith.constant 0 : i32
    %c0_i32_0 = arith.constant 0 : i32
    %c0_i32_1 = arith.constant 0 : i32
    return %c0_i32, %c0_i32_0 : i32, i32
  }
  func.func @transform_3(%arg0: i32) -> (i32, i32) {
    %c0_i32 = arith.constant 0 : i32
    %c0_i32_0 = arith.constant 0 : i32
    return %arg0, %c0_i32 : i32, i32
  }
  func.func @transform_4(%arg0: i32) -> (i32, i32) {
    %c0_i32 = arith.constant 0 : i32
    %c0_i32_0 = arith.constant 0 : i32
    %c0_i32_1 = arith.constant 0 : i32
    return %c0_i32, %c0_i32_0 : i32, i32
  }
  func.func @transform_5(%arg0: i32) -> (i32, i32) {
    %c0_i32 = arith.constant 0 : i32
    %c0_i32_0 = arith.constant 0 : i32
    %c0_i32_1 = arith.constant 0 : i32
    return %c0_i32, %c0_i32_0 : i32, i32
  }
  func.func @transform_6(%arg0: i32) -> (i32, i32) {
    %c0_i32 = arith.constant 0 : i32
    %c0_i32_0 = arith.constant 0 : i32
    return %arg0, %c0_i32 : i32, i32
  }
}

</mosaic_0001>

<bundles_post_ra>
// kernel: block_forward.5
= control target key start
LH: loop header
LB: loop body
LE: loop exit
PB: predicated region body
PF: predicated region fallthrough
CT: control target
= control target key end

     0   :  { %8 = vsyncpa [#allocation3], 0  ;;  %s166_s12 = smov [#allocation2]   ;;  %s218_s0 = inlined_call_operand.hbm [shape: f32[16,32], index: 0, kind: input, shape index: {}]   ;;  %s219_s1 = inlined_call_operand.vmem [shape: bf16[32,96], index: 1, kind: input, shape index: {}]   ;;  %s220_s2 = inlined_call_operand.vmem [shape: f32[1,96], index: 2, kind: input, shape index: {}]   ;;  %s221_s3 = inlined_call_operand.vmem [shape: bf16[16,96], index: 3, kind: output, shape index: {}]  }
   0x1   :  { %s14_s13 = sshll.u32 %s166_s12, 4  ;;  %s142_s16 = scalar_lea.hbm %s218_s0, 256  ;;  %s15_s13 = int_to_ptr.vmem [resolvable:$true] %s14_s13 }
   0x2   :  { %p143_p0 = scmp.ne.s32.totalorder %s218_s0, %s142_s16  ;;  %p146_p1 = scmp.lt.u32.totalorder %s142_s16, %s218_s0 }
   0x4   :  { %p148_p2 = pnand %p146_p1, %p143_p0 }
   0x6   :  { %151 = shalt.err (!%p148_p2)
}
   0x7   :  { %s152_s21 = scalar_lea.vmem %s15_s13, 256  ;;  %p157_p4 = scmp.lt.s32.totalorder %s15_s13, %s15_s13 }
   0x8   :  { %p153_p3 = scmp.ne.s32.totalorder %s15_s13, %s152_s21  ;;  %p158_p5 = scmp.lt.s32.totalorder %s152_s21, %s152_s21 }
   0xa   :  { %p159_p6 = por %p158_p5, %p157_p4 }
   0xc   :  { %p160_p7 = pnand %p159_p6, %p153_p3 }
   0xe   :  { %163 = shalt.err (!%p160_p7)
}
   0xf   :  { %s167_s22 = smov 128   ;;  %s168_s23 = smov 8  }
  0x10   :  { %20 = dma.hbm_to_vmem [thread:$0]  %s218_s0, 256, %s15_s13, [#allocation3], %s167_s22, %s167_s22, %s168_s23  }
  0x11   :  { %164 = dma.done.wait [#allocation3], 256  }
  0x12   :  { %165 = vsyncadd [#allocation3], 4294967040  ;;  %v169_v0 = vmov 0.0   ;;  %vm170_vm0 = vmmov 0   ;;  %v140_v1 = vld [vmem:[%s219_s1] sm:$0xff]   ;;  %v141_v2 = vld [vmem:[%s219_s1 + $0x8] sm:$0xff]  }
  0x13   :  { %127 = vmatprep.subr.bf16.mxu0 %v169_v0  ;;  %131 = vmatprep.mubr.msk.bf16.mxu0 %vm170_vm0, %v169_v0  ;;  %v29_v3 = vld [vmem:[#allocation2] sm:$0xff]  ;;  %v30_v4 = vld [vmem:[#allocation2 + $0x8] sm:$0xff]  ;;  %vm55_vm1 = vcmask 261120   ;;  %vm108_vm2 = vcmask 781312  }
  0x14   :  { %128 = vmatpush3.bf16.msra.mxu0 %v140_v1  ;;  %v31_v5 = vpack.c.bf16 %v30_v4, %v29_v3  ;;  %v116_v6 = vld [vmem:[%s220_s2] ss:$0 sm:$0xff] }
  0x15   :  { %129 = vmatprep.subr.bf16.mxu0 %v169_v0 }
  0x18   :  { %130 = vmatpush3.bf16.msra.mxu0 %v141_v2 }
  0x1b   :  { %132 = vmatmul.mubr.msk.bf16.vlgmr.msra.gmra.mrb[0].mxu0 %vm55_vm1, %v31_v5 }
  0xee   :  { %v93_v7 = vpop.f32.mrb[0].mxu0 }
  0xef   :  { %v94_v8 = vadd.f32 %v116_v6, %v93_v7  ;;  %v133_v9 = vpop.f32.mrb[1].mxu0 }
  0xf0   :  { %v96_v10 = vpop.f32.mrb[2].mxu0 }
  0xf1   :  { %v122_v11 = vpack.c.bf16 %v94_v8, %v94_v8  ;;  %v97_v12 = vadd.f32 %v116_v6, %v96_v10  ;;  %v134_v13 = vpop.f32.mrb[3].mxu0 }
  0xf3   :  { %109 = vst.msk [vmem:[%s221_s3] sm:$0xf] %vm108_vm2, %v122_v11  ;;  %v123_v14 = vpack.c.bf16 %v97_v12, %v97_v12 }
  0xf5   :  { %110 = vst.msk [vmem:[%s221_s3 + $0x4] sm:$0xf] %vm108_vm2, %v123_v14 }
  0xf6   :  { %115 = vsyncpa [#allocation3], 1 }

// kernel: block_forward.8
= control target key start
LH: loop header
LB: loop body
LE: loop exit
PB: predicated region body
PF: predicated region fallthrough
CT: control target
= control target key end

     0   :  { %v142_v0 = vmov 0.0   ;;  %vm143_vm0 = vmmov 0   ;;  %vm41_vm1 = vcmask 261120   ;;  %s182_s1 = inlined_call_operand.vmem [shape: bf16[32,128], index: 1, kind: input, shape index: {}]   ;;  %s183_s0 = inlined_call_operand.vmem [shape: f32[16,32], index: 0, kind: input, shape index: {}]   ;;  %s184_s2 = inlined_call_operand.vmem [shape: f32[1,128], index: 2, kind: input, shape index: {}]   ;;  %s185_s3 = inlined_call_operand.vmem [shape: bf16[16,128], index: 3, kind: output, shape index: {}]  }
   0x1   :  { %126 = vmatprep.subr.bf16.mxu0 %v142_v0  ;;  %v136_v1 = vld [vmem:[%s182_s1] sm:$0xff]   ;;  %130 = vmatprep.mubr.msk.bf16.mxu0 %vm143_vm0, %v142_v0  ;;  %v137_v2 = vld [vmem:[%s182_s1 + $0x8] sm:$0xff]  }
   0x2   :  { %127 = vmatpush3.bf16.msra.mxu0 %v136_v1  ;;  %v15_v3 = vld [vmem:[%s183_s0] sm:$0xff]  ;;  %v16_v4 = vld [vmem:[%s183_s0 + $0x8] sm:$0xff] }
   0x3   :  { %128 = vmatprep.subr.bf16.mxu0 %v142_v0  ;;  %v17_v5 = vpack.c.bf16 %v16_v4, %v15_v3  ;;  %v110_v6 = vld [vmem:[%s184_s2] ss:$0 sm:$0xff] }
   0x6   :  { %129 = vmatpush3.bf16.msra.mxu0 %v137_v2 }
   0x9   :  { %131 = vmatmul.mubr.msk.bf16.vlgmr.msra.gmra.mrb[0].mxu0 %vm41_vm1, %v17_v5 }
  0xdc   :  { %v79_v7 = vpop.f32.mrb[0].mxu0 }
  0xdd   :  { %v80_v8 = vadd.f32 %v110_v6, %v79_v7  ;;  %v132_v9 = vpop.f32.mrb[1].mxu0 }
  0xde   :  { %v82_v10 = vpop.f32.mrb[2].mxu0 }
  0xdf   :  { %v88_v11 = vmul.f32 0.70710677, %v80_v8  ;;  %v83_v12 = vadd.f32 %v110_v6, %v82_v10  ;;  %v133_v13 = vpop.f32.mrb[3].mxu0  ;;  %v86_v18 = vmul.f32 0.5, %v80_v8 }
  0xe1   :  { %138 = verf.f32 %v88_v11  ;;  %v89_v14 = vmul.f32 0.70710677, %v83_v12  ;;  %v87_v19 = vmul.f32 0.5, %v83_v12 }
  0xe3   :  { %140 = verf.f32 %v89_v14 }
  0xeb   :  { %v139_v15 = vpop.eup %138 }
  0xec   :  { %v92_v16 = vadd.f32 1.0, %v139_v15 }
  0xed   :  { %v141_v17 = vpop.eup %140 }
  0xee   :  { %v93_v20 = vadd.f32 1.0, %v141_v17  ;;  %v94_v21 = vmul.f32 %v92_v16, %v86_v18 }
  0xf0   :  { %v95_v22 = vmul.f32 %v93_v20, %v87_v19 }
  0xf2   :  { %v121_v23 = vpack.c.bf16 %v95_v22, %v94_v21 }
  0xf4   :  { %122 = vst [vmem:[%s185_s3] sm:$0xff] %v121_v23  }

// kernel: block_forward.7
= control target key start
LH: loop header
LB: loop body
LE: loop exit
PB: predicated region body
PF: predicated region fallthrough
CT: control target
= control target key end

     0   :  { %v181_v0 = vmov 0.0   ;;  %vm182_vm0 = vmmov 0   ;;  %vm54_vm1 = vcmask 261120   ;;  %s255_s1 = inlined_call_operand.vmem [shape: bf16[32,32], index: 1, kind: input, shape index: {}]   ;;  %s256_s0 = inlined_call_operand.vmem [shape: bf16[16,32], index: 0, kind: input, shape index: {}]   ;;  %s257_s2 = inlined_call_operand.vmem [shape: f32[1,32], index: 2, kind: input, shape index: {}]   ;;  %s258_s3 = inlined_call_operand.vmem [shape: f32[16,32], index: 3, kind: input, shape index: {}]   ;;  %s259_s4 = inlined_call_operand.vmem [shape: f32[1,32], index: 4, kind: input, shape index: {}]   ;;  %s260_s5 = inlined_call_operand.vmem [shape: f32[1,32], index: 5, kind: input, shape index: {}]   ;;  %s261_s6 = inlined_call_operand.vmem [shape: f32[16,32], index: 6, kind: output, shape index: {}]  }
   0x1   :  { %164 = vmatprep.subr.bf16.mxu0 %v181_v0  ;;  %v174_v1 = vld [vmem:[%s255_s1] sm:$0xff]   ;;  %168 = vmatprep.mubr.msk.bf16.mxu0 %vm182_vm0, %v181_v0  ;;  %v175_v2 = vld [vmem:[%s255_s1 + $0x8] sm:$0xff]  }
   0x2   :  { %165 = vmatpush3.bf16.msra.mxu0 %v174_v1  ;;  %v176_v3 = vld [vmem:[%s256_s0] sm:$0xff]   ;;  %v100_v10 = vld [vmem:[%s258_s3 + $0x8] sm:$0xff] }
   0x3   :  { %166 = vmatprep.subr.bf16.mxu0 %v181_v0  ;;  %v154_v4 = vld [vmem:[%s257_s2] ss:$0 sm:$0xff] }
   0x4   :  { %v99_v6 = vld [vmem:[%s258_s3] sm:$0xff] }
   0x5   :  { %v159_v34 = vld [vmem:[%s259_s4] ss:$0 sm:$0xff] }
   0x6   :  { %167 = vmatpush3.bf16.msra.mxu0 %v175_v2  ;;  %v160_v36 = vld [vmem:[%s260_s5] ss:$0 sm:$0xff] }
   0x9   :  { %169 = vmatmul.mubr.msk.bf16.vlgmr.msra.gmra.mrb[0].mxu0 %vm54_vm1, %v176_v3 }
  0xdc   :  { %v92_v5 = vpop.f32.mrb[0].mxu0 }
  0xdd   :  { %v93_v7 = vadd.f32 %v154_v4, %v92_v5  ;;  %v170_v8 = vpop.f32.mrb[1].mxu0 }
  0xde   :  { %v95_v9 = vpop.f32.mrb[2].mxu0 }
  0xdf   :  { %v96_v11 = vadd.f32 %v154_v4, %v95_v9  ;;  %v171_v12 = vpop.f32.mrb[3].mxu0  ;;  %v101_v13 = vadd.f32 %v99_v6, %v93_v7 }
  0xe1   :  { %v103_v14 = vsel %vm54_vm1, %v101_v13, 0.0  ;;  %v102_v15 = vadd.f32 %v100_v10, %v96_v11 }
  0xe2   :  { %104 = vadd.xlane.f32.xlu0 %v103_v14 }
  0xe3   :  { %v106_v16 = vsel %vm54_vm1, %v102_v15, 0.0 }
  0xe6   :  { %107 = vadd.xlane.f32.xlu0 %v106_v16 }
 0x16f   :  { %v105_v17 = vpop.xlane.xlu0 %104 }
 0x170   :  { %v110_v18 = vmul.f32 0.03125, %v105_v17 }
 0x172   :  { %v112_v19 = vsub.f32 %v101_v13, %v110_v18 }
 0x173   :  { %v108_v20 = vpop.xlane.xlu0 %107 }
 0x174   :  { %v111_v21 = vmul.f32 0.03125, %v108_v20  ;;  %v114_v22 = vmul.f32 %v112_v19, %v112_v19 }
 0x176   :  { %v113_v23 = vsub.f32 %v102_v15, %v111_v21  ;;  %v116_v24 = vsel %vm54_vm1, %v114_v22, 0.0 }
 0x177   :  { %117 = vadd.xlane.f32.xlu1 %v116_v24 }
 0x178   :  { %v115_v25 = vmul.f32 %v113_v23, %v113_v23 }
 0x17a   :  { %v119_v26 = vsel %vm54_vm1, %v115_v25, 0.0 }
 0x17b   :  { %120 = vadd.xlane.f32.xlu1 %v119_v26 }
 0x204   :  { %v118_v27 = vpop.xlane.xlu1 %117 }
 0x205   :  { %v122_v28 = vmul.f32 0.03125, %v118_v27 }
 0x207   :  { %v124_v29 = vadd.f32 1e-06, %v122_v28 }
 0x208   :  { %v121_v30 = vpop.xlane.xlu1 %120 }
 0x209   :  { %177 = vrsqrt.f32 %v124_v29  ;;  %v123_v31 = vmul.f32 0.03125, %v121_v30 }
 0x20b   :  { %v125_v32 = vadd.f32 1e-06, %v123_v31 }
 0x20d   :  { %179 = vrsqrt.f32 %v125_v32 }
 0x213   :  { %v178_v33 = vpop.eup %177 }
 0x214   :  { %v128_v35 = vmul.f32 %v178_v33, %v112_v19 }
 0x216   :  { %v137_v37 = vmul.f32 %v159_v34, %v128_v35 }
 0x217   :  { %v180_v38 = vpop.eup %179 }
 0x218   :  { %v146_v39 = vadd.f32 %v160_v36, %v137_v37  ;;  %v129_v40 = vmul.f32 %v180_v38, %v113_v23 }
 0x21a   :  { %148 = vst.msk [vmem:[%s261_s6] sm:$0xff] %vm54_vm1, %v146_v39  ;;  %v138_v41 = vmul.f32 %v159_v34, %v129_v40 }
 0x21c   :  { %v147_v42 = vadd.f32 %v160_v36, %v138_v41 }
 0x21e   :  { %149 = vst.msk [vmem:[%s261_s6 + $0x8] sm:$0xff] %vm54_vm1, %v147_v42 }

// kernel: block_forward.6
= control target key start
LH: loop header
LB: loop body
LE: loop exit
PB: predicated region body
PF: predicated region fallthrough
CT: control target
= control target key end

     0   :  { %s791_s6 = smov 0   ;;  %s885_s0 = inlined_call_operand.vmem [shape: bf16[2,8,96], index: 0, kind: input, shape index: {}]   ;;  %s886_s1 = inlined_call_operand.vmem [shape: bf16[2,8,32], index: 1, kind: output, shape index: {}]  }
   0x1 LB: > { %s634_s7 = sadd.s32 4294967295, %s763_s6   ;;  %p638_p0 = scmp.ge.s32.totalorder %s763_s6, 1  ;;  %s763_s6 = sphi %s791_s6, %s11_s6  }
   0x2   : > { %p86_p1 = scmp.lt.s32.totalorder %s763_s6, 3 }
   0x4   : > { %p87_p2 = pnand %p638_p0, %p86_p1 }
   0x5   : > { %p104_p3 = scmp.lt.s32.totalorder (!%p87_p2), %s634_s7, 1  ;;  %v765_v0 = vmov (!%p87_p2), 0.0   ;;  %vm766_vm0 = vmmov (!%p87_p2), 0   ;;  %s767_s12 = smov (!%p87_p2), 96   ;;  %vm119_vm1 = vcmask (!%p87_p2), 64512   ;;  %vm182_vm2 = vcmask (!%p87_p2), 1043456  }
   0x6   : > { %90 = sbr.rel (%p87_p2) target bundleno = 1247 (0x4df), region = 24  ;;  %668 = vmatprep.subr.bf16.mxu0 (!%p87_p2), %v765_v0  ;;  %670 = vmatprep.mubr.msk.bf16.mxu0 (!%p87_p2), %vm766_vm0, %v765_v0  ;;  %s768_s13 = smov (!%p87_p2), 64   ;;  %vm574_vm3 = vcmask (!%p87_p2), 130048   ;;  %vm576_vm4 = vcmask (!%p87_p2), 195584   ;;  %vm579_vm5 = vcmask (!%p87_p2), 257024  }
   0x7   : > { %674 = vmatprep.subr.bf16.mxu1 (!%p87_p2), %v765_v0  ;;  %676 = vmatprep.mubr.msk.bf16.mxu1 (!%p87_p2), %vm766_vm0, %v765_v0  ;;  %s769_s14 = smov (!%p87_p2), 88   ;;  %s770_s15 = smov (!%p87_p2), 120  }
   0x8   : > { %s771_s16 = smov (!%p87_p2), 80   ;;  %s772_s17 = smov (!%p87_p2), 112  }
   0x9   : > { %s773_s18 = smov (!%p87_p2), 72   ;;  %s774_s19 = smov (!%p87_p2), 104  }
   0xa   : > { %s775_s20 = smov (!%p87_p2), 56   ;;  %s776_s21 = smov (!%p87_p2), 48  }
   0xb   : > { %s777_s22 = smov (!%p87_p2), 40   ;;  %s778_s23 = smov (!%p87_p2), 8  }
   0xc   : > { %s779_s24 = smov (!%p87_p2), 16   ;;  %s780_s25 = smov (!%p87_p2), 24  }
   0xd   : > { %s888_s7 = smov (!%p104_p3, %s634_s7), 1 }
   0xe   : > { %s639_s8 = sshll.u32 %s888_s7, 2 }
   0xf   : > { %s107_s11 = scalar_lea.vmem %s885_s0, %s639_s8  ;;  %s111_s28 = scalar_lea.vmem %s886_s1, %s639_s8 }
  0x10   : > { %v113_v1 = vld [vmem:[%s107_s11] sm:$0xf] }
  0x11   : > { %v813_v2 = vcombine.low %v113_v1, %v113_v1 }
  0x13   : > { %117 = vrot.lane.b32.xlu0 %v813_v2, %s767_s12  ;;  %177 = vrot.lane.b32.xlu1 %v813_v2, %s768_s13 }
  0x17   : > { %230 = vrot.lane.b32.xlu1 %v813_v2, %s769_s14 }
  0x1b   : > { %228 = vrot.lane.b32.xlu1 %v813_v2, %s770_s15 }
  0x1f   : > { %341 = vrot.lane.b32.xlu1 %v813_v2, %s771_s16 }
  0x23   : > { %339 = vrot.lane.b32.xlu1 %v813_v2, %s772_s17 }
  0x27   : > { %452 = vrot.lane.b32.xlu1 %v813_v2, %s773_s18 }
  0x2b   : > { %450 = vrot.lane.b32.xlu1 %v813_v2, %s774_s19 }
  0x85   : > { %v118_v3 = vpop.permute.xlu0 %117  ;;  %v178_v11 = vpop.permute.xlu1 %177 }
  0x86   : > { %v124_v4 = vsel %vm119_vm1, %v118_v3, 0  ;;  %v184_v12 = vsel %vm182_vm2, %v178_v11, 0 }
  0x87   : > { %669 = vmatpush3.bf16.xpose.msra.mxu0 %v124_v4  ;;  %675 = vmatpush3.bf16.msra.mxu1 %v184_v12 }
  0x88   : > { %686 = vmatprep.subr.bf16.mxu0 %v765_v0  ;;  %680 = vmatprep.subr.bf16.mxu1 %v765_v0 }
  0x89   : > { %v231_v16 = vpop.permute.xlu1 %230 }
  0x8a   : > { %v236_v19 = vsel %vm119_vm1, %v231_v16, 0 }
  0x8d   : > { %v229_v17 = vpop.permute.xlu1 %228 }
  0x8e   : > { %671 = vmatmul.mubr.msk.bf16.vlgmr.msra.gmra.mrb[0].mxu0 %vm119_vm1, %v113_v1 }
  0x8f   : > { %688 = vmatprep.mubr.msk.bf16.mxu0 %vm766_vm0, %v765_v0 }
  0x91   : > { %v342_v21 = vpop.permute.xlu1 %341 }
  0x92   : > { %v347_v23 = vsel %vm119_vm1, %v342_v21, 0 }
  0x95   : > { %v340_v22 = vpop.permute.xlu1 %339 }
  0x99   : > { %v453_v24 = vpop.permute.xlu1 %452 }
  0x9a   : > { %v458_v25 = vsel %vm119_vm1, %v453_v24, 0 }
  0x9d   : > { %v451_v26 = vpop.permute.xlu1 %450 }
 0x161   : > { %v160_v5 = vpop.f32.mrb[0].mxu0 }
 0x162   : > { %v166_v6 = vmul.f32 0.35355338, %v160_v5  ;;  %v672_v7 = vpop.f32.mrb[1].mxu0 }
 0x163   : > { %v163_v8 = vpop.f32.mrb[2].mxu0 }
 0x164   : > { %v673_v9 = vpop.f32.mrb[3].mxu0  ;;  %v167_v10 = vsel %vm119_vm1, %v166_v6, -inf }
 0x165   : > { %168 = vmax.xlane.f32.xlu0 %v167_v10 }
 0x17b   : > { %289 = vrot.lane.b32.xlu0 %v813_v2, %s775_s20 }
 0x1f2   : > { %v169_v13 = vpop.xlane.xlu0 %168 }
 0x1f3   : > { %v170_v14 = vsub.f32 %v166_v6, %v169_v13 }
 0x1f5   : > { %v171_v15 = vmul.f32 1.442695, %v170_v14 }
 0x1f6   : > { %v290_v27 = vpop.permute.xlu0 %289 }
 0x1f7   : > { %741 = vpow2.f32 %v171_v15  ;;  %v295_v28 = vsel %vm182_vm2, %v290_v27, 0 }
 0x1f8   : > { %687 = vmatpush3.bf16.msra.mxu0 %v295_v28 }
 0x1f9   : > { %698 = vmatprep.subr.bf16.mxu0 %v765_v0 }
 0x201   : > { %v832_v18 = vpop.eup %741 }
 0x202   : > { %v176_v20 = vpack.c.bf16 %v832_v18, %v832_v18  ;;  %v173_v10 = vsel %vm119_vm1, %v832_v18, 0.0 }
 0x204   : > { %677 = vmatmul.mubr.msk.bf16.vlgmr.msra.gmra.mrb[0].mxu1 %vm119_vm1, %v176_v20 }
 0x205   : > { %681 = vmatpush3.bf16.xpose.msra.mxu1 %v236_v19  ;;  %682 = vmatprep.mubr.msk.bf16.mxu1 %vm766_vm0, %v765_v0 }
 0x206   : > { %692 = vmatprep.subr.bf16.mxu1 %v765_v0 }
 0x20c   : > { %683 = vmatmul.mubr.msk.bf16.vlgmr.msra.gmra.mrb[4].mxu1 %vm119_vm1, %v229_v17 }
 0x20d   : > { %693 = vmatpush3.bf16.xpose.msra.mxu1 %v347_v23  ;;  %694 = vmatprep.mubr.msk.bf16.mxu1 %vm766_vm0, %v765_v0 }
 0x20e   : > { %704 = vmatprep.subr.bf16.mxu1 %v765_v0 }
 0x214   : > { %695 = vmatmul.mubr.msk.bf16.vlgmr.msra.gmra.mrb[8].mxu1 %vm119_vm1, %v340_v22 }
 0x215   : > { %705 = vmatpush3.bf16.xpose.msra.mxu1 %v458_v25  ;;  %706 = vmatprep.mubr.msk.bf16.mxu1 %vm766_vm0, %v765_v0 }
 0x21c   : > { %707 = vmatmul.mubr.msk.bf16.vlgmr.msra.gmra.mrb[12].mxu1 %vm119_vm1, %v451_v26 }
 0x2d7   : > { %v853_v29 = vpop.f32.mrb[0].mxu1 }
 0x2d8   : > { %v678_v30 = vpop.f32.mrb[1].mxu1 }
 0x2d9   : > { %v223_v31 = vpop.f32.mrb[2].mxu1 }
 0x2da   : > { %v679_v32 = vpop.f32.mrb[3].mxu1 }
 0x2df   : > { %v272_v33 = vpop.f32.mrb[4].mxu1 }
 0x2e0   : > { %v278_v34 = vmul.f32 0.35355338, %v272_v33  ;;  %v684_v35 = vpop.f32.mrb[5].mxu1 }
 0x2e1   : > { %v275_v36 = vpop.f32.mrb[6].mxu1 }
 0x2e2   : > { %v685_v37 = vpop.f32.mrb[7].mxu1  ;;  %v279_v38 = vsel %vm119_vm1, %v278_v34, -inf }
 0x2e3   : > { %280 = vmax.xlane.f32.xlu1 %v279_v38 }
 0x2e7   : > { %v383_v39 = vpop.f32.mrb[8].mxu1 }
 0x2e8   : > { %v389_v40 = vmul.f32 0.35355338, %v383_v39  ;;  %v696_v41 = vpop.f32.mrb[9].mxu1 }
 0x2e9   : > { %v386_v42 = vpop.f32.mrb[10].mxu1 }
 0x2ea   : > { %v697_v43 = vpop.f32.mrb[11].mxu1  ;;  %v390_v44 = vsel %vm119_vm1, %v389_v40, -inf }
 0x2eb   : > { %391 = vmax.xlane.f32.xlu0 %v390_v44 }
 0x2ef   : > { %v494_v45 = vpop.f32.mrb[12].mxu1 }
 0x2f0   : > { %v500_v46 = vmul.f32 0.35355338, %v494_v45  ;;  %v708_v47 = vpop.f32.mrb[13].mxu1 }
 0x2f1   : > { %v497_v48 = vpop.f32.mrb[14].mxu1 }
 0x2f2   : > { %v709_v49 = vpop.f32.mrb[15].mxu1  ;;  %v501_v50 = vsel %vm119_vm1, %v500_v46, -inf }
 0x2f3   : > { %502 = vmax.xlane.f32.xlu0 %v501_v50 }
 0x2f4   : > { %400 = vrot.lane.b32.xlu1 %v813_v2, %s776_s21 }
 0x309   : > { %511 = vrot.lane.b32.xlu0 %v813_v2, %s777_s22 }
 0x370   : > { %v281_v51 = vpop.xlane.xlu1 %280 }
 0x371   : > { %v282_v52 = vsub.f32 %v278_v34, %v281_v51 }
 0x373   : > { %v283_v53 = vmul.f32 1.442695, %v282_v52 }
 0x374   : > { %v401_v57 = vpop.permute.xlu1 %400 }
 0x375   : > { %743 = vpow2.f32 %v283_v53  ;;  %v406_v59 = vsel %vm182_vm2, %v401_v57, 0 }
 0x378   : > { %v392_v54 = vpop.xlane.xlu0 %391 }
 0x379   : > { %v393_v55 = vsub.f32 %v389_v40, %v392_v54 }
 0x37b   : > { %v394_v56 = vmul.f32 1.442695, %v393_v55 }
 0x37d   : > { %745 = vpow2.f32 %v394_v56 }
 0x37f   : > { %v744_v58 = vpop.eup %743 }
 0x380   : > { %v503_v60 = vpop.xlane.xlu0 %502  ;;  %v285_v61 = vsel %vm119_vm1, %v744_v58, 0.0  ;;  %v288_v62 = vpack.c.bf16 %v744_v58, %v744_v58 }
 0x381   : > { %v504_v63 = vsub.f32 %v500_v46, %v503_v60  ;;  %286 = vadd.xlane.f32.xlu0 %v285_v61 }
 0x382   : > { %689 = vmatmul.mubr.msk.bf16.vlgmr.msra.gmra.mrb[4].mxu0 %vm119_vm1, %v288_v62 }
 0x383   : > { %v505_v1 = vmul.f32 1.442695, %v504_v63  ;;  %699 = vmatpush3.bf16.msra.mxu0 %v406_v59  ;;  %700 = vmatprep.mubr.msk.bf16.mxu0 %vm766_vm0, %v765_v0 }
 0x384   : > { %710 = vmatprep.subr.bf16.mxu0 %v765_v0  ;;  %v512_v2 = vpop.permute.xlu0 %511 }
 0x385   : > { %747 = vpow2.f32 %v505_v1  ;;  %v517_v4 = vsel %vm182_vm2, %v512_v2, 0 }
 0x387   : > { %v746_v3 = vpop.eup %745 }
 0x388   : > { %v396_v5 = vsel %vm119_vm1, %v746_v3, 0.0  ;;  %v399_v6 = vpack.c.bf16 %v746_v3, %v746_v3 }
 0x389   : > { %397 = vadd.xlane.f32.xlu1 %v396_v5 }
 0x38a   : > { %701 = vmatmul.mubr.msk.bf16.vlgmr.msra.gmra.mrb[8].mxu0 %vm119_vm1, %v399_v6 }
 0x38b   : > { %711 = vmatpush3.bf16.msra.mxu0 %v517_v4  ;;  %712 = vmatprep.mubr.msk.bf16.mxu0 %vm766_vm0, %v765_v0 }
 0x38f   : > { %v748_v7 = vpop.eup %747 }
 0x390   : > { %v507_v8 = vsel %vm119_vm1, %v748_v7, 0.0  ;;  %v510_v9 = vpack.c.bf16 %v748_v7, %v748_v7 }
 0x391   : > { %508 = vadd.xlane.f32.xlu0 %v507_v8 }
 0x392   : > { %713 = vmatmul.mubr.msk.bf16.vlgmr.msra.gmra.mrb[12].mxu0 %vm119_vm1, %v510_v9 }
 0x395   : > { %174 = vadd.xlane.f32.xlu0 %v173_v10 }
 0x40e   : > { %v287_v11 = vpop.xlane.xlu0 %286 }
 0x40f   : > { %749 = vrcp.f32 %v287_v11 }
 0x416   : > { %v398_v12 = vpop.xlane.xlu1 %397 }
 0x417   : > { %751 = vrcp.f32 %v398_v12 }
 0x419   : > { %v750_v13 = vpop.eup %749 }
 0x41e   : > { %v509_v17 = vpop.xlane.xlu0 %508 }
 0x41f   : > { %753 = vrcp.f32 %v509_v17 }
 0x421   : > { %v752_v20 = vpop.eup %751 }
 0x422   : > { %v175_v32 = vpop.xlane.xlu0 %174 }
 0x423   : > { %755 = vrcp.f32 %v175_v32 }
 0x429   : > { %v754_v25 = vpop.eup %753 }
 0x42d   : > { %v756_v33 = vpop.eup %755 }
 0x42e   : > { %v227_v35 = vmul.f32 %v756_v33, %v853_v29 }
 0x455   : > { %v331_v14 = vpop.f32.mrb[4].mxu0 }
 0x456   : > { %v338_v15 = vmul.f32 %v750_v13, %v331_v14  ;;  %v690_v16 = vpop.f32.mrb[5].mxu0 }
 0x457   : > { %v334_v0 = vpop.f32.mrb[6].mxu0 }
 0x458   : > { %562 = vrot.lane.b32.xlu0 %v338_v15, %s778_s23  ;;  %v691_v19 = vpop.f32.mrb[7].mxu0 }
 0x45d   : > { %v442_v21 = vpop.f32.mrb[8].mxu0 }
 0x45e   : > { %v449_v22 = vmul.f32 %v752_v20, %v442_v21  ;;  %v702_v23 = vpop.f32.mrb[9].mxu0 }
 0x45f   : > { %v445_v18 = vpop.f32.mrb[10].mxu0 }
 0x460   : > { %566 = vrot.lane.b32.xlu1 %v449_v22, %s779_s24  ;;  %v703_v24 = vpop.f32.mrb[11].mxu0 }
 0x465   : > { %v553_v26 = vpop.f32.mrb[12].mxu0 }
 0x466   : > { %v560_v27 = vmul.f32 %v754_v25, %v553_v26  ;;  %v714_v28 = vpop.f32.mrb[13].mxu0 }
 0x467   : > { %v556_v30 = vpop.f32.mrb[14].mxu0 }
 0x468   : > { %570 = vrot.lane.b32.xlu0 %v560_v27, %s780_s25  ;;  %v715_v31 = vpop.f32.mrb[15].mxu0 }
 0x4ca   : > { %v563_v34 = vpop.permute.xlu0 %562 }
 0x4cb   : > { %v573_v37 = vsel %vm119_vm1, %v227_v35, %v563_v34 }
 0x4d2   : > { %v567_v36 = vpop.permute.xlu1 %566 }
 0x4d3   : > { %v575_v38 = vsel %vm574_vm3, %v573_v37, %v567_v36 }
 0x4da   : > { %v571_v39 = vpop.permute.xlu0 %570 }
 0x4db   : > { %v577_v40 = vsel %vm576_vm4, %v575_v38, %v571_v39 }
 0x4dc   : > { %v578_v41 = vpack.c.bf16 %v577_v40, %v577_v40 }
 0x4de   : > { %580 = vst.msk [vmem:[%s111_s28] sm:$0xf] %vm579_vm5, %v578_v41 }
 0x4df PF: > { %s11_s6 = sadd.s32 1, %s763_s6  }
 0x4e0   : > { %p8_p4 = scmp.ge.s32.totalorder %s11_s6, 4  }
 0x4e2   :  { %10 = sbr.rel (!%p8_p4) target bundleno = 1 (0x1), region = 54 }

// kernel: block_forward.9
= control target key start
LH: loop header
LB: loop body
LE: loop exit
PB: predicated region body
PF: predicated region fallthrough
CT: control target
= control target key end

     0   :  { %v296_v1 = vmov 0.0   ;;  %vm297_vm0 = vmmov 0   ;;  %s396_s0 = inlined_call_operand.vmem [shape: bf16[16,128], index: 0, kind: input, shape index: {}]   ;;  %s397_s1 = inlined_call_operand.vmem [shape: bf16[128,32], index: 1, kind: input, shape index: {}]   ;;  %s398_s2 = inlined_call_operand.vmem [shape: f32[1,32], index: 2, kind: input, shape index: {}]   ;;  %s399_s3 = inlined_call_operand.vmem [shape: f32[16,32], index: 3, kind: input, shape index: {}]   ;;  %s400_s4 = inlined_call_operand.vmem [shape: f32[1,32], index: 4, kind: input, shape index: {}]   ;;  %s401_s5 = inlined_call_operand.vmem [shape: f32[1,32], index: 5, kind: input, shape index: {}]   ;;  %s402_s6 = inlined_call_operand.hbm [shape: f32[16,32], index: 6, kind: output, shape index: {}]  }
   0x1   :  { %v259_v0 = vld [vmem:[%s397_s1] sm:$0xff]   ;;  %234 = vmatprep.subr.bf16.mxu0 %v296_v1  ;;  %v260_v2 = vld [vmem:[%s397_s1 + $0x8] sm:$0xff]   ;;  %250 = vmatprep.mubr.msk.bf16.mxu0 %vm297_vm0, %v296_v1  ;;  %v261_v3 = vld [vmem:[%s397_s1 + $0x10] sm:$0xff]  }
   0x2   :  { %235 = vmatpush3.bf16.msra.mxu0 %v259_v0 }
   0x3   :  { %236 = vmatprep.subr.bf16.mxu0 %v296_v1 }
   0x6   :  { %237 = vmatpush3.bf16.msra.mxu0 %v260_v2 }
   0x7   :  { %238 = vmatprep.subr.bf16.mxu0 %v296_v1 }
   0x8   :  { %11 = vsyncpa [#allocation3], 0  ;;  %v262_v4 = vld [vmem:[%s397_s1 + $0x18] sm:$0xff]   ;;  %v263_v5 = vld [vmem:[%s397_s1 + $0x20] sm:$0xff]   ;;  %vm149_vm1 = vcmask 261120   ;;  %s298_s21 = smov [#allocation2]  }
   0x9   :  { %v264_v6 = vld [vmem:[%s397_s1 + $0x28] sm:$0xff]   ;;  %v265_v7 = vld [vmem:[%s397_s1 + $0x30] sm:$0xff]   ;;  %v266_v8 = vld [vmem:[%s397_s1 + $0x38] sm:$0xff]   ;;  %s202_s22 = sshll.u32 %s298_s21, 4  ;;  %s203_s22 = int_to_ptr.vmem [resolvable:$true] %s202_s22 }
   0xa   :  { %239 = vmatpush3.bf16.msra.mxu0 %v261_v3  ;;  %v267_v9 = vld [vmem:[%s396_s0] sm:$0xff]   ;;  %v146_v16 = vld [vmem:[%s399_s3 + $0x8] sm:$0xff]  ;;  %s272_s23 = scalar_lea.vmem %s203_s22, 256  ;;  %p277_p1 = scmp.lt.s32.totalorder %s203_s22, %s203_s22 }
   0xb   :  { %240 = vmatprep.subr.bf16.mxu0 %v296_v1  ;;  %v213_v10 = vld [vmem:[%s398_s2] ss:$0 sm:$0xff]  ;;  %p273_p0 = scmp.ne.s32.totalorder %s203_s22, %s272_s23  ;;  %p278_p2 = scmp.lt.s32.totalorder %s272_s23, %s272_s23 }
   0xc   :  { %v145_v12 = vld [vmem:[%s399_s3] sm:$0xff] }
   0xd   :  { %v223_v40 = vld [vmem:[%s400_s4] ss:$0 sm:$0xff]  ;;  %p279_p3 = por %p278_p2, %p277_p1 }
   0xe   :  { %241 = vmatpush3.bf16.msra.mxu0 %v262_v4  ;;  %v224_v42 = vld [vmem:[%s401_s5] ss:$0 sm:$0xff] }
   0xf   :  { %242 = vmatprep.subr.bf16.mxu0 %v296_v1  ;;  %p280_p4 = pnand %p279_p3, %p273_p0 }
  0x12   :  { %243 = vmatpush3.bf16.msra.mxu0 %v263_v5 }
  0x13   :  { %244 = vmatprep.subr.bf16.mxu0 %v296_v1 }
  0x16   :  { %245 = vmatpush3.bf16.msra.mxu0 %v264_v6 }
  0x17   :  { %246 = vmatprep.subr.bf16.mxu0 %v296_v1 }
  0x1a   :  { %247 = vmatpush3.bf16.msra.mxu0 %v265_v7 }
  0x1b   :  { %248 = vmatprep.subr.bf16.mxu0 %v296_v1 }
  0x1e   :  { %249 = vmatpush3.bf16.msra.mxu0 %v266_v8 }
  0x21   :  { %251 = vmatmul.mubr.bf16.vlgmr.msra.gmra.mrb[0].mxu0 %v267_v9 }
  0xf4   :  { %v138_v11 = vpop.f32.mrb[0].mxu0 }
  0xf5   :  { %v139_v13 = vadd.f32 %v213_v10, %v138_v11  ;;  %v252_v14 = vpop.f32.mrb[1].mxu0 }
  0xf6   :  { %v141_v15 = vpop.f32.mrb[2].mxu0 }
  0xf7   :  { %v142_v17 = vadd.f32 %v213_v10, %v141_v15  ;;  %v253_v18 = vpop.f32.mrb[3].mxu0  ;;  %v147_v19 = vadd.f32 %v145_v12, %v139_v13 }
  0xf9   :  { %v150_v20 = vsel %vm149_vm1, %v147_v19, 0.0  ;;  %v148_v21 = vadd.f32 %v146_v16, %v142_v17 }
  0xfa   :  { %151 = vadd.xlane.f32.xlu0 %v150_v20 }
  0xfb   :  { %v153_v22 = vsel %vm149_vm1, %v148_v21, 0.0 }
  0xfe   :  { %154 = vadd.xlane.f32.xlu0 %v153_v22 }
 0x187   :  { %v152_v23 = vpop.xlane.xlu0 %151 }
 0x188   :  { %v157_v24 = vmul.f32 0.03125, %v152_v23 }
 0x18a   :  { %v159_v25 = vsub.f32 %v147_v19, %v157_v24 }
 0x18b   :  { %v155_v26 = vpop.xlane.xlu0 %154 }
 0x18c   :  { %v158_v27 = vmul.f32 0.03125, %v155_v26  ;;  %v161_v28 = vmul.f32 %v159_v25, %v159_v25 }
 0x18e   :  { %v160_v29 = vsub.f32 %v148_v21, %v158_v27  ;;  %v163_v30 = vsel %vm149_vm1, %v161_v28, 0.0 }
 0x18f   :  { %164 = vadd.xlane.f32.xlu1 %v163_v30 }
 0x190   :  { %v162_v31 = vmul.f32 %v160_v29, %v160_v29 }
 0x192   :  { %v166_v32 = vsel %vm149_vm1, %v162_v31, 0.0 }
 0x193   :  { %167 = vadd.xlane.f32.xlu1 %v166_v32 }
 0x21c   :  { %v165_v33 = vpop.xlane.xlu1 %164 }
 0x21d   :  { %v169_v34 = vmul.f32 0.03125, %v165_v33 }
 0x21f   :  { %v171_v35 = vadd.f32 1e-06, %v169_v34 }
 0x220   :  { %v168_v36 = vpop.xlane.xlu1 %167 }
 0x221   :  { %268 = vrsqrt.f32 %v171_v35  ;;  %v170_v37 = vmul.f32 0.03125, %v168_v36 }
 0x223   :  { %v172_v38 = vadd.f32 1e-06, %v170_v37 }
 0x225   :  { %270 = vrsqrt.f32 %v172_v38 }
 0x22b   :  { %v269_v39 = vpop.eup %268 }
 0x22c   :  { %v175_v41 = vmul.f32 %v269_v39, %v159_v25 }
 0x22e   :  { %v184_v43 = vmul.f32 %v223_v40, %v175_v41 }
 0x22f   :  { %v271_v44 = vpop.eup %270 }
 0x230   :  { %v176_v45 = vmul.f32 %v271_v44, %v160_v29  ;;  %v193_v46 = vadd.f32 %v224_v42, %v184_v43 }
 0x232   :  { %v185_v47 = vmul.f32 %v223_v40, %v176_v45  ;;  %195 = vst.msk [vmem:[#allocation2] sm:$0xff] %vm149_vm1, %v193_v46 }
 0x234   :  { %v194_v48 = vadd.f32 %v224_v42, %v185_v47 }
 0x236   :  { %196 = vst.msk [vmem:[#allocation2 + $0x8] sm:$0xff] %vm149_vm1, %v194_v48 }
 0x237   :  { %283 = shalt.err (!%p280_p4)
}
 0x238   :  { %s284_s24 = scalar_lea.hbm %s402_s6, 256 }
 0x239   :  { %p285_p5 = scmp.ne.s32.totalorder %s402_s6, %s284_s24  ;;  %p288_p6 = scmp.lt.u32.totalorder %s284_s24, %s402_s6 }
 0x23b   :  { %p290_p7 = pnand %p288_p6, %p285_p5 }
 0x23d   :  { %293 = shalt.err (!%p290_p7)
}
 0x23e   :  { %s299_s29 = smov 128   ;;  %s300_s30 = smov 8  }
 0x23f   :  { %208 = dma.vmem_to_hbm [thread:$0]  %s203_s22, 256, %s402_s6, [#allocation3], %s299_s29, %s299_s29, %s300_s30  }
 0x240   :  { %294 = dma.done.wait [#allocation3], 256  }
 0x241   :  { %295 = vsyncadd [#allocation3], 4294967040 }
 0x242   :  { %212 = vsyncpa [#allocation3], 1 }

</bundles_post_ra>
